<compile_context>
chip_gen: v7x
topology: tpu7x:2x2x1
jax: 0.10.0
libtpu: 0.0.40
codegen_flags: <defaults>
</compile_context>

<pallas_src>
import functools
import random

import jax
import jax.numpy as jnp
from jax import lax
from jax.experimental import pallas as pl
from jax.experimental.pallas import tpu as pltpu

LANE = 128


def _round_up(n, m):
    return (n + m - 1) // m * m


def dynamicnet_kernel(n_ref, x_ref, w1_ref, b_ref, w2_ref, w3_ref, o_ref):
    # input_linear + clamp(min=0): bf16 MXU operands, f32 accumulation,
    # bias-add / ReLU on the f32 accumulator.
    x = x_ref[...].astype(jnp.bfloat16)
    h = jnp.dot(x, w1_ref[...], preferred_element_type=jnp.float32)
    h = jnp.maximum(h + b_ref[0:1, :], 0.0)

    # middle_linear applied n times (shared weights, as in the module). Weight and
    # bias loads are hoisted out of the loop; trip count comes from SMEM so the same
    # compiled kernel serves n = 0..3.
    w2 = w2_ref[...]
    b2 = b_ref[1:2, :]

    def middle(_, h_carry):
        hm = jnp.dot(h_carry.astype(jnp.bfloat16), w2,
                     preferred_element_type=jnp.float32)
        return jnp.maximum(hm + b2, 0.0)

    h = lax.fori_loop(0, n_ref[0], middle, h)

    # output_linear (no activation); output block is 128-lane dense (padded).
    y = jnp.dot(h.astype(jnp.bfloat16), w3_ref[...],
                preferred_element_type=jnp.float32) + b_ref[2:3, :]
    o_ref[...] = y.astype(o_ref.dtype)


def init_params(key, d_in, h, d_out):
    """torch.nn.Linear default init U(-1/sqrt(fan_in), 1/sqrt(fan_in)) on the true
    (unpadded) fan_in, zero-padded to lane-dense widths. Weights bf16, biases f32
    merged into a single (3, 128) array (rows: input/middle/output bias)."""
    h_p, d_out_p = _round_up(h, LANE), _round_up(d_out, LANE)
    ks = jax.random.split(key, 6)

    def linear(kw, kb, fan_in, fan_out, fan_in_p, fan_out_p):
        bound = 1.0 / float(fan_in) ** 0.5
        w_t = jax.random.uniform(kw, (fan_in, fan_out), jnp.float32, -bound, bound)
        b = jax.random.uniform(kb, (fan_out,), jnp.float32, -bound, bound)
        w_t_p = jnp.zeros((fan_in_p, fan_out_p), jnp.float32).at[:fan_in, :fan_out].set(w_t)
        b_p = jnp.zeros((fan_out_p,), jnp.float32).at[:fan_out].set(b)
        return w_t_p.astype(jnp.bfloat16), b_p

    # Input layer keeps its natural fan_in (1000) -- no wrapper-side padding of x.
    w1_t, b1 = linear(ks[0], ks[1], d_in, h, d_in, h_p)
    w2_t, b2 = linear(ks[2], ks[3], h, h, h_p, h_p)
    w3_t, b3 = linear(ks[4], ks[5], h, d_out, h_p, d_out_p)
    b_all = jnp.stack([b1, b2, b3], axis=0)  # (3, 128) f32
    return dict(w1_t=w1_t, w2_t=w2_t, w3_t=w3_t, b_all=b_all,
                d_in=d_in, h=h, d_out=d_out)


def dynamicnet_forward(x, params, num_middle, *, tb=None):
    """x: [B, d_in] float32 (natural, unpadded). num_middle: python int (0..3),
    re-drawn per call like PyTorch's forward -- fed as a scalar-prefetch operand so
    it never triggers recompilation. Returns the lane-padded output [B, 128] f32;
    slice [:, :d_out] at the consumer."""
    b, d_in = x.shape
    h_p = params["w1_t"].shape[1]
    d_out_p = params["w3_t"].shape[1]

    # Few fat tiles: whole batch in one grid step unless the batch is large.
    if tb is None:
        tb = b if b <= 512 else 256
    b_p = _round_up(b, tb)
    if b_p != b:
        x = jnp.pad(x, ((0, b_p - b), (0, 0)))
    grid = (b_p // tb,)
    # TODO(synk): on v7x, pltpu.CORE_PARALLEL on the batch axis (grid a multiple of 2)
    # would guarantee the 2-TensorCore split; "parallel"/"arbitrary" kept here for
    # portability across generations.
    dim_sem = ("arbitrary",) if grid[0] == 1 else ("parallel",)

    # Advisory cost estimate (upper bound n=3 middle layers).
    flops = 2 * b_p * (d_in * h_p + 3 * h_p * h_p + h_p * d_out_p)
    bytes_accessed = (
        b_p * d_in * 4
        + (params["w1_t"].size + params["w2_t"].size + params["w3_t"].size) * 2
        + params["b_all"].size * 4
        + b_p * d_out_p * 4)

    n_arr = jnp.asarray([num_middle], dtype=jnp.int32)

    out_p = pl.pallas_call(
        dynamicnet_kernel,
        out_shape=jax.ShapeDtypeStruct((b_p, d_out_p), jnp.float32),
        grid_spec=pltpu.PrefetchScalarGridSpec(
            num_scalar_prefetch=1,  # num_middle -> SMEM
            grid=grid,
            in_specs=[
                # activation tile: streams over the batch grid (f32, full 1000-wide)
                pl.BlockSpec((tb, d_in), lambda i, n: (i, 0)),
                # weights & biases: same block every step -> stay VMEM-resident
                pl.BlockSpec((d_in, h_p), lambda i, n: (0, 0)),
                pl.BlockSpec((3, h_p), lambda i, n: (0, 0)),
                pl.BlockSpec((h_p, h_p), lambda i, n: (0, 0)),
                pl.BlockSpec((h_p, d_out_p), lambda i, n: (0, 0)),
            ],
            out_specs=pl.BlockSpec((tb, d_out_p), lambda i, n: (i, 0)),
        ),
        compiler_params=pltpu.CompilerParams(dimension_semantics=dim_sem),
        cost_estimate=pl.CostEstimate(
            flops=flops, bytes_accessed=bytes_accessed, transcendentals=0),
    )(n_arr, x, params["w1_t"], params["b_all"], params["w2_t"], params["w3_t"])

    return out_p  # [b_p, 128]; consumer slices [:b, :d_out]


def reference_forward(x, params, num_middle):
    """Pure-JAX mirror of the kernel math (bf16 operands, f32 accumulation)."""
    h = jnp.dot(x.astype(jnp.bfloat16), params["w1_t"],
                preferred_element_type=jnp.float32)
    h = jnp.maximum(h + params["b_all"][0:1, :], 0.0)
    for _ in range(num_middle):
        h = jnp.dot(h.astype(jnp.bfloat16), params["w2_t"],
                    preferred_element_type=jnp.float32)
        h = jnp.maximum(h + params["b_all"][1:2, :], 0.0)
    y = jnp.dot(h.astype(jnp.bfloat16), params["w3_t"],
                preferred_element_type=jnp.float32) + params["b_all"][2:3, :]
    return y


if __name__ == "__main__":
    # Tutorial shapes: batch=64, d_in=1000, h=100, d_out=10.
    BATCH, D_IN, H, D_OUT = 64, 1000, 100, 10

    key = jax.random.PRNGKey(0)
    kx, kp = jax.random.split(key)
    x = jax.random.normal(kx, (BATCH, D_IN), dtype=jnp.float32)
    params = init_params(kp, D_IN, H, D_OUT)

    # PyTorch's forward re-samples randint(0, 3) on every call; do the same here.
    # The count rides in via scalar prefetch, so no recompile between calls.
    random.seed(0)
    for _ in range(4):
        num_middle = random.randint(0, 3)
        y_full = jax.block_until_ready(dynamicnet_forward(x, params, num_middle))
        y = y_full[:, :D_OUT]
        y_ref = reference_forward(x, params, num_middle)[:, :D_OUT]
        assert y.shape == (BATCH, D_OUT)
        err = float(jnp.max(jnp.abs(y - y_ref)))
        assert jnp.allclose(y, y_ref, atol=1e-2, rtol=1e-2), (num_middle, err)

    print("KERNEL_OK")
</pallas_src>

<mosaic_0001>
module attributes {stable_mosaic.version = 11 : i64} {
  func.func @dynamicnet_kernel(%arg0: i32, %arg1: memref<1xi32, #tpu.memory_space<smem>>, %arg2: memref<64x1000xf32, #tpu.memory_space<vmem>>, %arg3: memref<1000x128xbf16, #tpu.memory_space<vmem>>, %arg4: memref<3x128xf32, #tpu.memory_space<vmem>>, %arg5: memref<128x128xbf16, #tpu.memory_space<vmem>>, %arg6: memref<128x128xbf16, #tpu.memory_space<vmem>>, %arg7: memref<64x128xf32, #tpu.memory_space<vmem>>) attributes {dimension_semantics = [#tpu.dimension_semantics<arbitrary>], iteration_bounds = array<i64: 1>, scalar_prefetch = 1 : i64, scratch_operands = 0 : i64, tpu.core_type = #tpu.core_type<tc>, window_params = [{transform_indices = @transform_0, window_bounds = array<i64: 64, 1000>}, {pipeline_mode = #tpu.pipeline_mode<synchronous>, transform_indices = @transform_1, window_bounds = array<i64: 1000, 128>}, {pipeline_mode = #tpu.pipeline_mode<synchronous>, transform_indices = @transform_2, window_bounds = array<i64: 3, 128>}, {pipeline_mode = #tpu.pipeline_mode<synchronous>, transform_indices = @transform_3, window_bounds = array<i64: 128, 128>}, {pipeline_mode = #tpu.pipeline_mode<synchronous>, transform_indices = @transform_4, window_bounds = array<i64: 128, 128>}, {transform_indices = @transform_5, window_bounds = array<i64: 64, 128>}]} {
    %c0 = arith.constant 0 : index
    %c0_0 = arith.constant 0 : index
    %0 = vector.load %arg2[%c0, %c0_0] : memref<64x1000xf32, #tpu.memory_space<vmem>>, vector<64x1000xf32>
    %1 = arith.truncf %0 : vector<64x1000xf32> to vector<64x1000xbf16>
    %c0_1 = arith.constant 0 : index
    %c0_2 = arith.constant 0 : index
    %2 = vector.load %arg3[%c0_1, %c0_2] : memref<1000x128xbf16, #tpu.memory_space<vmem>>, vector<1000x128xbf16>
    %cst = arith.constant dense<0.000000e+00> : vector<64x128xf32>
    %3 = tpu.matmul %1, %2, %cst {dimension_numbers = #tpu.dot_dimension_numbers<[1], [0], [0], [1], [0, 0, 1, 1], [], []>} : vector<64x1000xbf16>, vector<1000x128xbf16>, vector<64x128xf32> -> vector<64x128xf32>
    %c0_3 = arith.constant 0 : index
    %c0_4 = arith.constant 0 : index
    %4 = vector.load %arg4[%c0_3, %c0_4] : memref<3x128xf32, #tpu.memory_space<vmem>>, vector<1x128xf32>
    %5 = vector.broadcast %4 : vector<1x128xf32> to vector<64x128xf32>
    %6 = arith.addf %3, %5 : vector<64x128xf32>
    %cst_5 = arith.constant 0.000000e+00 : f32
    %7 = vector.broadcast %cst_5 : f32 to vector<64x128xf32>
    %8 = arith.maximumf %6, %7 : vector<64x128xf32>
    %c0_6 = arith.constant 0 : index
    %c0_7 = arith.constant 0 : index
    %9 = vector.load %arg5[%c0_6, %c0_7] : memref<128x128xbf16, #tpu.memory_space<vmem>>, vector<128x128xbf16>
    %c1 = arith.constant 1 : index
    %c0_8 = arith.constant 0 : index
    %10 = vector.load %arg4[%c1, %c0_8] : memref<3x128xf32, #tpu.memory_space<vmem>>, vector<1x128xf32>
    %c0_9 = arith.constant 0 : index
    %11 = memref.load %arg1[%c0_9] : memref<1xi32, #tpu.memory_space<smem>>
    %c0_i32 = arith.constant 0 : i32
    %12 = arith.subi %11, %c0_i32 : i32
    %13 = arith.addi %c0_i32, %12 : i32
    %c1_i32 = arith.constant 1 : i32
    %14 = scf.for %arg8 = %c0_i32 to %13 step %c1_i32 iter_args(%arg9 = %8) -> (vector<64x128xf32>)  : i32 {
      %22 = arith.truncf %arg9 : vector<64x128xf32> to vector<64x128xbf16>
      %cst_16 = arith.constant dense<0.000000e+00> : vector<64x128xf32>
      %23 = tpu.matmul %22, %9, %cst_16 {dimension_numbers = #tpu.dot_dimension_numbers<[1], [0], [0], [1], [0, 0, 1, 1], [], []>} : vector<64x128xbf16>, vector<128x128xbf16>, vector<64x128xf32> -> vector<64x128xf32>
      %24 = vector.broadcast %10 : vector<1x128xf32> to vector<64x128xf32>
      %25 = arith.addf %23, %24 : vector<64x128xf32>
      %cst_17 = arith.constant 0.000000e+00 : f32
      %26 = vector.broadcast %cst_17 : f32 to vector<64x128xf32>
      %27 = arith.maximumf %25, %26 : vector<64x128xf32>
      scf.yield %27 : vector<64x128xf32>
    }
    %15 = arith.truncf %14 : vector<64x128xf32> to vector<64x128xbf16>
    %c0_10 = arith.constant 0 : index
    %c0_11 = arith.constant 0 : index
    %16 = vector.load %arg6[%c0_10, %c0_11] : memref<128x128xbf16, #tpu.memory_space<vmem>>, vector<128x128xbf16>
    %cst_12 = arith.constant dense<0.000000e+00> : vector<64x128xf32>
    %17 = tpu.matmul %15, %16, %cst_12 {dimension_numbers = #tpu.dot_dimension_numbers<[1], [0], [0], [1], [0, 0, 1, 1], [], []>} : vector<64x128xbf16>, vector<128x128xbf16>, vector<64x128xf32> -> vector<64x128xf32>
    %c2 = arith.constant 2 : index
    %c0_13 = arith.constant 0 : index
    %18 = vector.load %arg4[%c2, %c0_13] : memref<3x128xf32, #tpu.memory_space<vmem>>, vector<1x128xf32>
    %19 = vector.broadcast %18 : vector<1x128xf32> to vector<64x128xf32>
    %20 = arith.addf %17, %19 : vector<64x128xf32>
    %c0_14 = arith.constant 0 : index
    %c0_15 = arith.constant 0 : index
    %21 = vector.load %arg7[%c0_14, %c0_15] : memref<64x128xf32, #tpu.memory_space<vmem>>, vector<64x128xf32>
    tpu.vector_store %arg7[%c0_14, %c0_15], %20 {strides = array<i32>} : memref<64x128xf32, #tpu.memory_space<vmem>>, vector<64x128xf32>,
    return
  }
  func.func @transform_0(%arg0: i32, %arg1: memref<1xi32, #tpu.memory_space<smem>>) -> (i32, i32) {
    %c0_i32 = arith.constant 0 : i32
    %c0_i32_0 = arith.constant 0 : i32
    return %arg0, %c0_i32 : i32, i32
  }
  func.func @transform_1(%arg0: i32, %arg1: memref<1xi32, #tpu.memory_space<smem>>) -> (i32, i32) {
    %c0_i32 = arith.constant 0 : i32
    %c0_i32_0 = arith.constant 0 : i32
    %c0_i32_1 = arith.constant 0 : i32
    return %c0_i32, %c0_i32_0 : i32, i32
  }
  func.func @transform_2(%arg0: i32, %arg1: memref<1xi32, #tpu.memory_space<smem>>) -> (i32, i32) {
    %c0_i32 = arith.constant 0 : i32
    %c0_i32_0 = arith.constant 0 : i32
    %c0_i32_1 = arith.constant 0 : i32
    return %c0_i32, %c0_i32_0 : i32, i32
  }
  func.func @transform_3(%arg0: i32, %arg1: memref<1xi32, #tpu.memory_space<smem>>) -> (i32, i32) {
    %c0_i32 = arith.constant 0 : i32
    %c0_i32_0 = arith.constant 0 : i32
    %c0_i32_1 = arith.constant 0 : i32
    return %c0_i32, %c0_i32_0 : i32, i32
  }
  func.func @transform_4(%arg0: i32, %arg1: memref<1xi32, #tpu.memory_space<smem>>) -> (i32, i32) {
    %c0_i32 = arith.constant 0 : i32
    %c0_i32_0 = arith.constant 0 : i32
    %c0_i32_1 = arith.constant 0 : i32
    return %c0_i32, %c0_i32_0 : i32, i32
  }
  func.func @transform_5(%arg0: i32, %arg1: memref<1xi32, #tpu.memory_space<smem>>) -> (i32, i32) {
    %c0_i32 = arith.constant 0 : i32
    %c0_i32_0 = arith.constant 0 : i32
    return %arg0, %c0_i32 : i32, i32
  }
}

</mosaic_0001>

<bundles_post_ra>
// kernel: tpu_custom_call.1
= control target key start
LH: loop header
LB: loop body
LE: loop exit
PB: predicated region body
PF: predicated region fallthrough
CT: control target
= control target key end

     0   :  { %12 = vsyncpa [#allocation5], 0  ;;  %s2409_s0 = inlined_call_operand.<no memory space> [shape: s32[1], index: 0, kind: input, shape index: {}]   ;;  %s2410_s1 = inlined_call_operand.hbm [shape: f32[64,1000], index: 1, kind: input, shape index: {}]   ;;  %s2411_s2 = inlined_call_operand.hbm [shape: bf16[1000,128], index: 2, kind: input, shape index: {}]   ;;  %s2412_s3 = inlined_call_operand.vmem [shape: f32[3,128], index: 3, kind: input, shape index: {}]   ;;  %s2413_s4 = inlined_call_operand.hbm [shape: bf16[128,128], index: 4, kind: input, shape index: {}]   ;;  %s2414_s5 = inlined_call_operand.hbm [shape: bf16[128,128], index: 5, kind: input, shape index: {}]   ;;  %s2415_s6 = inlined_call_operand.hbm [shape: f32[64,128], index: 6, kind: output, shape index: {}]  }
   0x1   :  { %13 = vsyncpa [#allocation8], 0 }
   0x2   :  { %14 = vsyncpa [#allocation11], 0 }
   0x3   :  { %15 = vsyncpa [#allocation6], 0  ;;  %s2103_s21 = smov [#allocation7]   ;;  %s1849_s25 = scalar_lea.hbm %s2411_s2, 8000 }
   0x4   :  { %s33_s22 = sshll.u32 %s2103_s21, 4  ;;  %p1850_p0 = scmp.ne.s32.totalorder %s2411_s2, %s1849_s25  ;;  %s34_s22 = int_to_ptr.vmem [resolvable:$true] %s33_s22 }
   0x5   :  { %p1853_p1 = scmp.lt.u32.totalorder %s1849_s25, %s2411_s2 }
   0x7   :  { %p1855_p2 = pnand %p1853_p1, %p1850_p0 }
   0x9   :  { %1858 = shalt.err (!%p1855_p2)
}
   0xa   :  { %s1859_s30 = scalar_lea.vmem %s34_s22, 8000  ;;  %p1864_p4 = scmp.lt.s32.totalorder %s34_s22, %s34_s22 }
   0xb   :  { %p1860_p3 = scmp.ne.s32.totalorder %s34_s22, %s1859_s30  ;;  %p1865_p5 = scmp.lt.s32.totalorder %s1859_s30, %s1859_s30 }
   0xd   :  { %p1866_p6 = por %p1865_p5, %p1864_p4 }
   0xf   :  { %p1867_p7 = pnand %p1866_p6, %p1860_p3 }
  0x11   :  { %1870 = shalt.err (!%p1867_p7)
}
  0x12   :  { %s2104_s7 = smov 64   ;;  %s2105_s8 = smov 4  }
  0x13   :  { %39 = dma.hbm_to_vmem [thread:$0]  %s2411_s2, 8000, %s34_s22, [#allocation8], %s2104_s7, %s2104_s7, %s2105_s8  }
  0x14   :  { %s2106_s11 = smov [#allocation4]   ;;  %s1871_s15 = scalar_lea.hbm %s2410_s1, 8192 }
  0x15   :  { %s21_s12 = sshll.u32 %s2106_s11, 4  ;;  %p1872_p8 = scmp.ne.s32.totalorder %s2410_s1, %s1871_s15  ;;  %s22_s12 = int_to_ptr.vmem [resolvable:$true] %s21_s12 }
  0x16   :  { %p1875_p9 = scmp.lt.u32.totalorder %s1871_s15, %s2410_s1 }
  0x18   :  { %p1877_p10 = pnand %p1875_p9, %p1872_p8 }
  0x1a   :  { %1880 = shalt.err (!%p1877_p10)
}
  0x1b   :  { %s1881_s20 = scalar_lea.vmem %s22_s12, 8192  ;;  %p1886_p12 = scmp.lt.s32.totalorder %s22_s12, %s22_s12 }
  0x1c   :  { %p1882_p11 = scmp.ne.s32.totalorder %s22_s12, %s1881_s20  ;;  %p1887_p13 = scmp.lt.s32.totalorder %s1881_s20, %s1881_s20 }
  0x1e   :  { %p1888_p0 = por %p1887_p13, %p1886_p12 }
  0x20   :  { %p1889_p1 = pnand %p1888_p0, %p1882_p11 }
  0x22   :  { %1892 = shalt.err (!%p1889_p1)
}
  0x23   :  { %s2107_s2 = smov 1024   ;;  %s2108_s23 = smov [#allocation9]  }
  0x24   :  { %27 = dma.hbm_to_vmem [thread:$0]  %s2410_s1, 8192, %s22_s12, [#allocation5], %s2107_s2, %s2107_s2, %s2104_s7  }
  0x25   :  { %s47_s24 = sshll.u32 %s2108_s23, 4  ;;  %s2109_s25 = smov [#allocation10]   ;;  %s48_s24 = int_to_ptr.vmem [resolvable:$true] %s47_s24 }
  0x26   :  { %s59_s26 = sshll.u32 %s2109_s25, 4  ;;  %s1893_s29 = scalar_lea.hbm %s2413_s4, 1024  ;;  %s60_s26 = int_to_ptr.vmem [resolvable:$true] %s59_s26 }
  0x27   :  { %p1894_p2 = scmp.ne.s32.totalorder %s2413_s4, %s1893_s29  ;;  %p1897_p3 = scmp.lt.u32.totalorder %s1893_s29, %s2413_s4 }
  0x29   :  { %p1899_p4 = pnand %p1897_p3, %p1894_p2 }
  0x2b   :  { %1902 = shalt.err (!%p1899_p4)
}
  0x2c   :  { %s1903_s1 = scalar_lea.vmem %s48_s24, 1024  ;;  %p1908_p6 = scmp.lt.s32.totalorder %s48_s24, %s48_s24 }
  0x2d   :  { %p1904_p5 = scmp.ne.s32.totalorder %s48_s24, %s1903_s1  ;;  %p1909_p7 = scmp.lt.s32.totalorder %s1903_s1, %s1903_s1 }
  0x2f   :  { %p1910_p8 = por %p1909_p7, %p1908_p6 }
  0x31   :  { %p1911_p9 = pnand %p1910_p8, %p1904_p5 }
  0x33   :  { %1914 = shalt.err (!%p1911_p9)
}
  0x34   :  { %53 = dma.hbm_to_vmem [thread:$0]  %s2413_s4, 1024, %s48_s24, [#allocation8], %s2104_s7, %s2104_s7, %s2105_s8  }
  0x35   :  { %s1915_s16 = scalar_lea.hbm %s2414_s5, 1024 }
  0x36   :  { %p1916_p10 = scmp.ne.s32.totalorder %s2414_s5, %s1915_s16  ;;  %p1919_p11 = scmp.lt.u32.totalorder %s1915_s16, %s2414_s5 }
  0x38   :  { %p1921_p12 = pnand %p1919_p11, %p1916_p10 }
  0x3a   :  { %1924 = shalt.err (!%p1921_p12)
}
  0x3b   :  { %s1925_s2 = scalar_lea.vmem %s60_s26, 1024  ;;  %p1930_p0 = scmp.lt.s32.totalorder %s60_s26, %s60_s26 }
  0x3c   :  { %p1926_p13 = scmp.ne.s32.totalorder %s60_s26, %s1925_s2  ;;  %p1931_p1 = scmp.lt.s32.totalorder %s1925_s2, %s1925_s2 }
  0x3e   :  { %p1932_p2 = por %p1931_p1, %p1930_p0 }
  0x40   :  { %p1933_p3 = pnand %p1932_p2, %p1926_p13 }
  0x42   :  { %1936 = shalt.err (!%p1933_p3)
}
  0x43   :  { %65 = dma.hbm_to_vmem [thread:$0]  %s2414_s5, 1024, %s60_s26, [#allocation11], %s2104_s7, %s2104_s7, %s2105_s8  }
  0x44   :  { %2027 = dma.done.wait [#allocation5], 8192  }
  0x45   :  { %2028 = vsyncadd [#allocation5], 4294959104 }
  0x46   :  { %2029 = dma.done.wait [#allocation8], 9024  }
  0x47   :  { %2030 = vsyncadd [#allocation8], 4294958272 }
  0x48   :  { %2031 = dma.done.wait [#allocation11], 1024  }
  0x49   :  { %2032 = vsyncadd [#allocation11], 4294966272  ;;  %v2207_v0 = vld [vmem:[#allocation9] sm:$0xf]  ;;  %v2209_v1 = vld [vmem:[#allocation9 + $0x4] sm:$0xf] }
  0x4a   :  { %v2211_v2 = vld [vmem:[#allocation9 + $0x8] sm:$0xf]  ;;  %v2213_v3 = vld [vmem:[#allocation9 + $0xc] sm:$0xf]  ;;  %v2215_v4 = vld [vmem:[#allocation9 + $0x10] sm:$0xf] }
  0x4b   :  { %v2217_v5 = vld [vmem:[#allocation9 + $0x14] sm:$0xf]  ;;  %v2219_v6 = vld [vmem:[#allocation9 + $0x18] sm:$0xf]  ;;  %v2221_v7 = vld [vmem:[#allocation9 + $0x1c] sm:$0xf] }
  0x4c   :  { %v2223_v8 = vld [vmem:[#allocation9 + $0x20] sm:$0xf]  ;;  %v2225_v9 = vld [vmem:[#allocation9 + $0x24] sm:$0xf]  ;;  %v2227_v10 = vld [vmem:[#allocation9 + $0x28] sm:$0xf] }
  0x4d   :  { %v2229_v11 = vld [vmem:[#allocation9 + $0x2c] sm:$0xf]  ;;  %v2231_v12 = vld [vmem:[#allocation9 + $0x30] sm:$0xf]  ;;  %v2233_v13 = vld [vmem:[#allocation9 + $0x34] sm:$0xf] }
  0x4e   :  { %v2235_v14 = vld [vmem:[#allocation9 + $0x38] sm:$0xf]  ;;  %v2237_v15 = vld [vmem:[#allocation9 + $0x3c] sm:$0xf]  ;;  %v2242_v16 = vld [vmem:[%s2412_s3 + $0x1] ss:$0 sm:$0xff] }
  0x4f   :  { %v1778_v17 = vld [vmem:[#allocation7 + $0x40] sm:$0xff]   ;;  %v1782_v21 = vld [vmem:[#allocation7 + $0x48] sm:$0xff]   ;;  %v1786_v25 = vld [vmem:[#allocation7 + $0x50] sm:$0xff]   ;;  %v2110_v60 = vmov 0   ;;  %vm680_vm0 = vcmask 850944   ;;  %vm693_vm1 = vcmask 1043456  }
  0x50   :  { %v1779_v18 = vld [vmem:[#allocation7 + $0xc0] sm:$0xff]   ;;  %1407 = vmatprep.subr.bf16.mxu0 %v1778_v17  ;;  %v1783_v22 = vld [vmem:[#allocation7 + $0xc8] sm:$0xff]   ;;  %v1787_v26 = vld [vmem:[#allocation7 + $0xd0] sm:$0xff]   ;;  %p1388_p4 = scmp.le.s32.totalorder %s2409_s0, 0 }
  0x51   :  { %v1780_v19 = vld [vmem:[#allocation7] sm:$0xff]   ;;  %1447 = vmatprep.subr.bf16.mxu1 %v1779_v18  ;;  %v1784_v23 = vld [vmem:[#allocation7 + $0x8] sm:$0xff]   ;;  %v1788_v27 = vld [vmem:[#allocation7 + $0x10] sm:$0xff]   ;;  %s2311_s25 = smov (!%p1388_p4), 0  }
  0x52   :  { %v1781_v20 = vld [vmem:[#allocation7 + $0x80] sm:$0xff]   ;;  %1408 = vmatpush3.bf16.msra.mxu0 %v1780_v19  ;;  %v1785_v24 = vld [vmem:[#allocation7 + $0x88] sm:$0xff]   ;;  %v1789_v28 = vld [vmem:[#allocation7 + $0x90] sm:$0xff]  }
  0x53   :  { %1448 = vmatpush3.bf16.msra.mxu1 %v1781_v20  ;;  %1409 = vmatprep.subr.bf16.mxu0 %v1782_v21  ;;  %v1790_v29 = vld [vmem:[#allocation7 + $0x58] sm:$0xff]   ;;  %v1794_v33 = vld [vmem:[#allocation7 + $0x60] sm:$0xff]   ;;  %v1798_v37 = vld [vmem:[#allocation7 + $0x68] sm:$0xff]  }
  0x54   :  { %1449 = vmatprep.subr.bf16.mxu1 %v1783_v22  ;;  %v1791_v30 = vld [vmem:[#allocation7 + $0xd8] sm:$0xff]   ;;  %v1795_v34 = vld [vmem:[#allocation7 + $0xe0] sm:$0xff]   ;;  %v1799_v38 = vld [vmem:[#allocation7 + $0xe8] sm:$0xff]  }
  0x55   :  { %v1792_v31 = vld [vmem:[#allocation7 + $0x18] sm:$0xff]   ;;  %v1796_v35 = vld [vmem:[#allocation7 + $0x20] sm:$0xff]   ;;  %v1800_v39 = vld [vmem:[#allocation7 + $0x28] sm:$0xff]  }
  0x56   :  { %1410 = vmatpush3.bf16.msra.mxu0 %v1784_v23  ;;  %v1793_v32 = vld [vmem:[#allocation7 + $0x98] sm:$0xff]   ;;  %v1797_v36 = vld [vmem:[#allocation7 + $0xa0] sm:$0xff]   ;;  %v1801_v40 = vld [vmem:[#allocation7 + $0xa8] sm:$0xff]  }
  0x57   :  { %1450 = vmatpush3.bf16.msra.mxu1 %v1785_v24  ;;  %1411 = vmatprep.subr.bf16.mxu0 %v1786_v25  ;;  %v1802_v41 = vld [vmem:[#allocation7 + $0x70] sm:$0xff]   ;;  %v1806_v45 = vld [vmem:[#allocation7 + $0x78] sm:$0xff]   ;;  %v80_v49 = vld [vmem:[#allocation4 + $0x8] sm:$0xff] }
  0x58   :  { %1451 = vmatprep.subr.bf16.mxu1 %v1787_v26  ;;  %v1803_v42 = vld [vmem:[#allocation7 + $0xf0] sm:$0xff]   ;;  %v1807_v46 = vld [vmem:[#allocation7 + $0xf8] sm:$0xff]   ;;  %v88_v50 = vld [vmem:[#allocation4 + $0x48] sm:$0xff] }
  0x59   :  { %v1804_v43 = vld [vmem:[#allocation7 + $0x30] sm:$0xff]   ;;  %v1808_v47 = vld [vmem:[#allocation7 + $0x38] sm:$0xff]   ;;  %v144_v53 = vpack.c.bf16 %v88_v50, %v80_v49  ;;  %v79_v55 = vld [vmem:[#allocation4] sm:$0xff] }
  0x5a   :  { %1412 = vmatpush3.bf16.msra.mxu0 %v1788_v27  ;;  %v1805_v44 = vld [vmem:[#allocation7 + $0xb0] sm:$0xff]   ;;  %v1809_v48 = vld [vmem:[#allocation7 + $0xb8] sm:$0xff]   ;;  %v87_v56 = vld [vmem:[#allocation4 + $0x40] sm:$0xff] }
  0x5b   :  { %1452 = vmatpush3.bf16.msra.mxu1 %v1789_v28  ;;  %1413 = vmatprep.subr.bf16.mxu0 %v1790_v29  ;;  %v82_v51 = vld [vmem:[#allocation4 + $0x18] sm:$0xff]  ;;  %v81_v57 = vld [vmem:[#allocation4 + $0x10] sm:$0xff]  ;;  %v143_v58 = vpack.c.bf16 %v87_v56, %v79_v55  ;;  %v1810_v62 = vld [vmem:[#allocation7 + $0x140] sm:$0xff]  }
  0x5c   :  { %1453 = vmatprep.subr.bf16.mxu1 %v1791_v30  ;;  %v90_v52 = vld [vmem:[#allocation4 + $0x58] sm:$0xff]  ;;  %v89_v59 = vld [vmem:[#allocation4 + $0x50] sm:$0xff]  ;;  %729 = vmatprep.mubr.bf16.mxu0 %v144_v53  ;;  %v1811_v63 = vld [vmem:[#allocation7 + $0x100] sm:$0xff]  }
  0x5d   :  { %v146_v54 = vpack.c.bf16 %v90_v52, %v82_v51  ;;  %v145_v61 = vpack.c.bf16 %v89_v59, %v81_v57  ;;  %v1812_v17 = vld [vmem:[#allocation7 + $0x180] sm:$0xff]   ;;  %v1813_v18 = vld [vmem:[#allocation7 + $0x148] sm:$0xff]   ;;  %v1816_v27 = vld [vmem:[#allocation7 + $0x150] sm:$0xff]  }
  0x5e   :  { %1414 = vmatpush3.bf16.msra.mxu0 %v1792_v31  ;;  %v1814_v19 = vld [vmem:[#allocation7 + $0x108] sm:$0xff]   ;;  %v95_v24 = vld [vmem:[#allocation4 + $0x80] sm:$0xff]  ;;  %v1817_v28 = vld [vmem:[#allocation7 + $0x110] sm:$0xff]  }
  0x5f   :  { %1454 = vmatpush3.bf16.msra.mxu1 %v1793_v32  ;;  %1415 = vmatprep.subr.bf16.mxu0 %v1794_v33  ;;  %v1815_v20 = vld [vmem:[#allocation7 + $0x188] sm:$0xff]   ;;  %v103_v25 = vld [vmem:[#allocation4 + $0xc0] sm:$0xff]  ;;  %v1818_v29 = vld [vmem:[#allocation7 + $0x190] sm:$0xff]  }
  0x60   :  { %1455 = vmatprep.subr.bf16.mxu1 %v1795_v34  ;;  %794 = vmatprep.mubr.bf16.mxu1 %v146_v54  ;;  %v96_v21 = vld [vmem:[#allocation4 + $0x88] sm:$0xff]  ;;  %v151_v26 = vpack.c.bf16 %v103_v25, %v95_v24  ;;  %v1819_v30 = vld [vmem:[#allocation7 + $0x158] sm:$0xff]   ;;  %v135_v49 = vld [vmem:[#allocation4 + $0x1c0] sm:$0xff] }
  0x61   :  { %v104_v22 = vld [vmem:[#allocation4 + $0xc8] sm:$0xff]  ;;  %v1820_v31 = vld [vmem:[#allocation7 + $0x118] sm:$0xff]   ;;  %v1828_v51 = vld [vmem:[#allocation7 + $0x170] sm:$0xff]  }
  0x62   :  { %1416 = vmatpush3.bf16.msra.mxu0 %v1796_v35  ;;  %v152_v23 = vpack.c.bf16 %v104_v22, %v96_v21  ;;  %v1821_v32 = vld [vmem:[#allocation7 + $0x198] sm:$0xff]   ;;  %v112_v33 = vld [vmem:[#allocation4 + $0x108] sm:$0xff]  ;;  %v111_v35 = vld [vmem:[#allocation4 + $0x100] sm:$0xff] }
  0x63   :  { %1456 = vmatpush3.bf16.msra.mxu1 %v1797_v36  ;;  %1417 = vmatprep.subr.bf16.mxu0 %v1798_v37  ;;  %v120_v34 = vld [vmem:[#allocation4 + $0x148] sm:$0xff]  ;;  %v119_v36 = vld [vmem:[#allocation4 + $0x140] sm:$0xff]  ;;  %v1829_v52 = vld [vmem:[#allocation7 + $0x130] sm:$0xff]  }
  0x64   :  { %1457 = vmatprep.subr.bf16.mxu1 %v1799_v38  ;;  %v160_v37 = vpack.c.bf16 %v120_v34, %v112_v33  ;;  %v159_v38 = vpack.c.bf16 %v119_v36, %v111_v35  ;;  %v1830_v53 = vld [vmem:[#allocation7 + $0x1b0] sm:$0xff]   ;;  %v1831_v54 = vld [vmem:[#allocation7 + $0x178] sm:$0xff]   ;;  %v1834_v25 = vld [vmem:[#allocation7 + $0x1c0] sm:$0xff]  }
  0x65   :  { %v98_v55 = vld [vmem:[#allocation4 + $0x98] sm:$0xff]  ;;  %v99_v33 = vld [vmem:[#allocation4 + $0xa0] sm:$0xff] }
  0x66   :  { %1418 = vmatpush3.bf16.msra.mxu0 %v1800_v39  ;;  %v1822_v39 = vld [vmem:[#allocation7 + $0x160] sm:$0xff]   ;;  %v106_v56 = vld [vmem:[#allocation4 + $0xd8] sm:$0xff] }
  0x67   :  { %1458 = vmatpush3.bf16.msra.mxu1 %v1801_v40  ;;  %1419 = vmatprep.subr.bf16.mxu0 %v1802_v41  ;;  %v1823_v40 = vld [vmem:[#allocation7 + $0x120] sm:$0xff]   ;;  %v154_v57 = vpack.c.bf16 %v106_v56, %v98_v55  ;;  %v1833_v59 = vld [vmem:[#allocation7 + $0x1b8] sm:$0xff]  }
  0x68   :  { %1459 = vmatprep.subr.bf16.mxu1 %v1803_v42  ;;  %v1824_v41 = vld [vmem:[#allocation7 + $0x1a0] sm:$0xff]   ;;  %v1825_v42 = vld [vmem:[#allocation7 + $0x168] sm:$0xff]   ;;  %v122_v24 = vld [vmem:[#allocation4 + $0x158] sm:$0xff] }
  0x69   :  { %v107_v35 = vld [vmem:[#allocation4 + $0xe0] sm:$0xff]  ;;  %v130_v36 = vld [vmem:[#allocation4 + $0x198] sm:$0xff] }
  0x6a   :  { %1420 = vmatpush3.bf16.msra.mxu0 %v1804_v43  ;;  %v1826_v43 = vld [vmem:[#allocation7 + $0x128] sm:$0xff]  }
  0x6b   :  { %1460 = vmatpush3.bf16.msra.mxu1 %v1805_v44  ;;  %1421 = vmatprep.subr.bf16.mxu0 %v1806_v45  ;;  %v1827_v44 = vld [vmem:[#allocation7 + $0x1a8] sm:$0xff]  }
  0x6c   :  { %1461 = vmatprep.subr.bf16.mxu1 %v1807_v46  ;;  %v128_v45 = vld [vmem:[#allocation4 + $0x188] sm:$0xff] }
  0x6d   :  { %v136_v46 = vld [vmem:[#allocation4 + $0x1c8] sm:$0xff] }
  0x6e   :  { %1422 = vmatpush3.bf16.msra.mxu0 %v1808_v47  ;;  %v127_v47 = vld [vmem:[#allocation4 + $0x180] sm:$0xff] }
  0x6f   :  { %1462 = vmatpush3.bf16.msra.mxu1 %v1809_v48  ;;  %1487 = vmatprep.subr.bf16.mxu0 %v1810_v62  ;;  %v168_v48 = vpack.c.bf16 %v136_v46, %v128_v45  ;;  %v167_v50 = vpack.c.bf16 %v135_v49, %v127_v47  ;;  %v105_v62 = vld [vmem:[#allocation4 + $0xd0] sm:$0xff]  ;;  %v115_v46 = vld [vmem:[#allocation4 + $0x120] sm:$0xff]  ;;  %v86_v49 = vld [vmem:[#allocation4 + $0x38] sm:$0xff] }
  0x70   :  { %892 = vmatprep.subr.bf16.mxu1 %v2110_v60  ;;  %v137_v45 = vld [vmem:[#allocation4 + $0x1d0] sm:$0xff] }
  0x71   :  { %730 = vmatmul.mubr.bf16.vlgmr.msra.gmra.mrb[0].mxu0 %v143_v58  ;;  %v1832_v58 = vld [vmem:[#allocation7 + $0x138] sm:$0xff]  }
  0x72   :  { %795 = vmatmul.mubr.bf16.vlgmr.msra.gmra.mrb[0].mxu1 %v145_v61  ;;  %1488 = vmatpush3.bf16.msra.mxu0 %v1811_v63  ;;  %v97_v61 = vld [vmem:[#allocation4 + $0x90] sm:$0xff]  ;;  %v84_v63 = vld [vmem:[#allocation4 + $0x28] sm:$0xff] }
  0x73   :  { %893 = vmatpush1.bf16.msra.mxu1 %v1812_v17  ;;  %1489 = vmatprep.subr.bf16.mxu0 %v1813_v18  ;;  %v153_v17 = vpack.c.bf16 %v105_v62, %v97_v61  ;;  %v92_v18 = vld [vmem:[#allocation4 + $0x68] sm:$0xff]  ;;  %v1840_v62 = vld [vmem:[#allocation7 + $0x1f0] ss:$0 sps:$4 sm:$0xff]  }
  0x74   :  { %894 = vmatprep.subr.bf16.mxu1 %v2110_v60  ;;  %737 = vmatprep.mubr.bf16.mxu0 %v152_v23  ;;  %v148_v21 = vpack.c.bf16 %v92_v18, %v84_v63  ;;  %v114_v23 = vld [vmem:[#allocation4 + $0x118] sm:$0xff]  ;;  %v1839_v61 = vld [vmem:[#allocation7 + $0x1e8] sm:$0xff]   ;;  %v93_v18 = vld [vmem:[#allocation4 + $0x70] sm:$0xff] }
  0x75   :  { %802 = vmatprep.mubr.bf16.mxu1 %v154_v57  ;;  %v1838_v57 = vld [vmem:[#allocation7 + $0x1e0] sm:$0xff]  }
  0x76   :  { %1490 = vmatpush3.bf16.msra.mxu0 %v1814_v19  ;;  %v83_v19 = vld [vmem:[#allocation4 + $0x20] sm:$0xff] }
  0x77   :  { %895 = vmatpush1.bf16.msra.mxu1 %v1815_v20  ;;  %1491 = vmatprep.subr.bf16.mxu0 %v1816_v27  ;;  %v91_v20 = vld [vmem:[#allocation4 + $0x60] sm:$0xff]  ;;  %v113_v27 = vld [vmem:[#allocation4 + $0x110] sm:$0xff] }
  0x78   :  { %896 = vmatprep.subr.bf16.mxu1 %v2110_v60  ;;  %v147_v22 = vpack.c.bf16 %v91_v20, %v83_v19  ;;  %v695_v19 = vsel %vm693_vm1, %v1840_v62, 0  ;;  %v102_v20 = vld [vmem:[#allocation4 + $0xb8] sm:$0xff] }
  0x79   :  { %738 = vmatmul.mubr.bf16.gmra.mrb[4].mxu0 %v151_v26  ;;  %v162_v26 = vpack.c.bf16 %v122_v24, %v114_v23  ;;  %v101_v24 = vld [vmem:[#allocation4 + $0xb0] sm:$0xff] }
  0x7a   :  { %1492 = vmatpush3.bf16.msra.mxu0 %v1817_v28  ;;  %745 = vmatprep.mubr.bf16.mxu0 %v160_v37  ;;  %v121_v28 = vld [vmem:[#allocation4 + $0x150] sm:$0xff]  ;;  %v138_v37 = vld [vmem:[#allocation4 + $0x1d8] sm:$0xff] }
  0x7b   :  { %897 = vmatpush1.bf16.msra.mxu1 %v1818_v29  ;;  %1493 = vmatprep.subr.bf16.mxu0 %v1819_v30  ;;  %v100_v29 = vld [vmem:[#allocation4 + $0xa8] sm:$0xff]  ;;  %v161_v34 = vpack.c.bf16 %v121_v28, %v113_v27  ;;  %v126_v27 = vld [vmem:[#allocation4 + $0x178] sm:$0xff] }
  0x7c   :  { %898 = vmatprep.subr.bf16.mxu1 %v2110_v60  ;;  %803 = vmatmul.mubr.bf16.gmra.mrb[4].mxu1 %v153_v17  ;;  %v108_v30 = vld [vmem:[#allocation4 + $0xe8] sm:$0xff]  ;;  %v85_v17 = vld [vmem:[#allocation4 + $0x30] sm:$0xff] }
  0x7d   :  { %810 = vmatprep.mubr.bf16.mxu1 %v162_v26  ;;  %v118_v26 = vld [vmem:[#allocation4 + $0x138] sm:$0xff] }
  0x7e   :  { %1494 = vmatpush3.bf16.msra.mxu0 %v1820_v31  ;;  %v1835_v31 = vld [vmem:[#allocation7 + $0x1c8] sm:$0xff]  }
  0x7f   :  { %899 = vmatpush1.bf16.msra.mxu1 %v1821_v32  ;;  %1495 = vmatprep.subr.bf16.mxu0 %v1822_v39  ;;  %v156_v32 = vpack.c.bf16 %v108_v30, %v100_v29  ;;  %v155_v39 = vpack.c.bf16 %v107_v35, %v99_v33  ;;  %v166_v29 = vpack.c.bf16 %v126_v27, %v118_v26  ;;  %v125_v30 = vld [vmem:[#allocation4 + $0x170] sm:$0xff] }
  0x80   :  { %900 = vmatprep.subr.bf16.mxu1 %v2110_v60  ;;  %v133_v35 = vld [vmem:[#allocation4 + $0x1b0] sm:$0xff] }
  0x81   :  { %746 = vmatmul.mubr.bf16.gmra.mrb[8].mxu0 %v159_v38  ;;  %v170_v38 = vpack.c.bf16 %v138_v37, %v130_v36  ;;  %v141_v36 = vld [vmem:[#allocation4 + $0x1f0] sm:$0xff] }
  0x82   :  { %1496 = vmatpush3.bf16.msra.mxu0 %v1823_v40  ;;  %753 = vmatprep.mubr.bf16.mxu0 %v168_v48  ;;  %v1836_v40 = vld [vmem:[#allocation7 + $0x1d0] sm:$0xff]   ;;  %v123_v48 = vld [vmem:[#allocation4 + $0x160] sm:$0xff]  ;;  %v173_v37 = vpack.c.bf16 %v141_v36, %v133_v35 }
  0x83   :  { %901 = vmatpush1.bf16.msra.mxu1 %v1824_v41  ;;  %1497 = vmatprep.subr.bf16.mxu0 %v1825_v42  ;;  %v116_v41 = vld [vmem:[#allocation4 + $0x128] sm:$0xff]  ;;  %v163_v55 = vpack.c.bf16 %v123_v48, %v115_v46 }
  0x84   :  { %902 = vmatprep.subr.bf16.mxu1 %v2110_v60  ;;  %v124_v42 = vld [vmem:[#allocation4 + $0x168] sm:$0xff]  ;;  %811 = vmatmul.mubr.bf16.gmra.mrb[8].mxu1 %v161_v34 }
  0x85   :  { %818 = vmatprep.mubr.bf16.mxu1 %v170_v38 }
  0x86   :  { %1498 = vmatpush3.bf16.msra.mxu0 %v1826_v43  ;;  %v129_v43 = vld [vmem:[#allocation4 + $0x190] sm:$0xff] }
  0x87   :  { %903 = vmatpush1.bf16.msra.mxu1 %v1827_v44  ;;  %1499 = vmatprep.subr.bf16.mxu0 %v1828_v51  ;;  %v164_v44 = vpack.c.bf16 %v124_v42, %v116_v41  ;;  %v169_v47 = vpack.c.bf16 %v137_v45, %v129_v43  ;;  %v1837_v51 = vld [vmem:[#allocation7 + $0x1d8] sm:$0xff]  }
  0x88   :  { %904 = vmatprep.subr.bf16.mxu1 %v2110_v60 }
  0x89   :  { %754 = vmatmul.mubr.bf16.gmra.mrb[12].mxu0 %v167_v50  ;;  %v94_v50 = vld [vmem:[#allocation4 + $0x78] sm:$0xff] }
  0x8a   :  { %1500 = vmatpush3.bf16.msra.mxu0 %v1829_v52  ;;  %859 = vmatprep.mubr.bf16.mxu0 %v148_v21  ;;  %v132_v52 = vld [vmem:[#allocation4 + $0x1a8] sm:$0xff]  ;;  %v110_v21 = vld [vmem:[#allocation4 + $0xf8] sm:$0xff] }
  0x8b   :  { %905 = vmatpush1.bf16.msra.mxu1 %v1830_v53  ;;  %1501 = vmatprep.subr.bf16.mxu0 %v1831_v54  ;;  %v140_v53 = vld [vmem:[#allocation4 + $0x1e8] sm:$0xff]  ;;  %v150_v54 = vpack.c.bf16 %v94_v50, %v86_v49  ;;  %v158_v23 = vpack.c.bf16 %v110_v21, %v102_v20 }
  0x8c   :  { %906 = vmatprep.subr.bf16.mxu1 %v2110_v60  ;;  %819 = vmatmul.mubr.bf16.gmra.mrb[12].mxu1 %v169_v47  ;;  %v172_v56 = vpack.c.bf16 %v140_v53, %v132_v52 }
  0x8d   :  { %1384 = vmatprep.mubr.msk.bf16.mxu1 %vm680_vm0, %v150_v54 }
  0x8e   :  { %1502 = vmatpush3.bf16.msra.mxu0 %v1832_v58  ;;  %v131_v58 = vld [vmem:[#allocation4 + $0x1a0] sm:$0xff] }
  0x8f   :  { %907 = vmatpush1.bf16.msra.mxu1 %v1833_v59  ;;  %v139_v59 = vld [vmem:[#allocation4 + $0x1e0] sm:$0xff] }
  0x90   :  { %908 = vmatprep.subr.bf16.mxu1 %v2110_v60  ;;  %v171_v63 = vpack.c.bf16 %v139_v59, %v131_v58 }
  0x91   :  { %860 = vmatmul.mubr.bf16.vlgmr.msra.gmra.mrb[16].mxu0 %v147_v22  ;;  %v149_v22 = vpack.c.bf16 %v93_v18, %v85_v17 }
  0x92   :  { %867 = vmatprep.mubr.bf16.mxu0 %v156_v32  ;;  %v142_v32 = vld [vmem:[#allocation4 + $0x1f8] sm:$0xff] }
  0x93   :  { %909 = vmatpush1.bf16.msra.mxu1 %v1834_v25  ;;  %v109_v25 = vld [vmem:[#allocation4 + $0xf0] sm:$0xff] }
  0x94   :  { %910 = vmatprep.subr.bf16.mxu1 %v2110_v60  ;;  %v157_v28 = vpack.c.bf16 %v109_v25, %v101_v24 }
  0x97   :  { %911 = vmatpush1.bf16.msra.mxu1 %v1835_v31  ;;  %v134_v31 = vld [vmem:[#allocation4 + $0x1b8] sm:$0xff] }
  0x98   :  { %912 = vmatprep.subr.bf16.mxu1 %v2110_v60  ;;  %v174_v34 = vpack.c.bf16 %v142_v32, %v134_v31 }
  0x99   :  { %868 = vmatmul.mubr.bf16.gmra.mrb[20].mxu0 %v155_v39 }
  0x9a   :  { %875 = vmatprep.mubr.bf16.mxu0 %v164_v44 }
  0x9b   :  { %913 = vmatpush1.bf16.msra.mxu1 %v1836_v40  ;;  %v2266_v40 = vld [vmem:[%s2412_s3] ss:$0 sm:$0xff] }
  0x9c   :  { %914 = vmatprep.subr.bf16.mxu1 %v2110_v60 }
  0x9f   :  { %915 = vmatpush1.bf16.msra.mxu1 %v1837_v51 }
  0xa0   :  { %916 = vmatprep.subr.bf16.mxu1 %v2110_v60 }
  0xa1   :  { %876 = vmatmul.mubr.bf16.gmra.mrb[24].mxu0 %v163_v55 }
  0xa2   :  { %883 = vmatprep.mubr.bf16.mxu0 %v172_v56 }
  0xa3   :  { %917 = vmatpush1.bf16.msra.mxu1 %v1838_v57 }
  0xa4   :  { %918 = vmatprep.subr.bf16.mxu1 %v2110_v60 }
  0xa7   :  { %919 = vmatpush1.bf16.msra.mxu1 %v1839_v61 }
  0xa8   :  { %920 = vmatprep.subr.bf16.mxu1 %v2110_v60  ;;  %v117_v60 = vld [vmem:[#allocation4 + $0x130] sm:$0xff] }
  0xa9   :  { %884 = vmatmul.mubr.bf16.gmra.mrb[28].mxu0 %v171_v63  ;;  %v165_v33 = vpack.c.bf16 %v125_v30, %v117_v60 }
  0xab   :  { %921 = vmatpush1.bf16.msra.mxu1 %v695_v19 }
  0xae   :  { %925 = vmatmul.mubr.bf16.vlgmr.msra.gmra.mrb[16].mxu1 %v149_v22 }
  0xaf   :  { %1385 = vmatprep.mubr.msk.bf16.mxu1 %vm680_vm0, %v158_v23 }
  0xb6   :  { %933 = vmatmul.mubr.bf16.gmra.mrb[20].mxu1 %v157_v28 }
  0xb7   :  { %1386 = vmatprep.mubr.msk.bf16.mxu1 %vm680_vm0, %v166_v29 }
  0xbe   :  { %941 = vmatmul.mubr.bf16.gmra.mrb[24].mxu1 %v165_v33 }
  0xbf   :  { %1387 = vmatprep.mubr.msk.bf16.mxu1 %vm680_vm0, %v174_v34 }
  0xc6   :  { %949 = vmatmul.mubr.bf16.gmra.mrb[28].mxu1 %v173_v37 }
 0x144   :  { %v1423_v38 = vpop.f32.mrb[0].mxu0 }
 0x145   :  { %v1463_v39 = vpop.f32.mrb[0].mxu1  ;;  %v1424_v41 = vpop.f32.mrb[1].mxu0 }
 0x146   :  { %v1425_v42 = vadd.f32 %v1424_v41, %v1423_v38  ;;  %v1464_v43 = vpop.f32.mrb[1].mxu1  ;;  %v1426_v44 = vpop.f32.mrb[2].mxu0 }
 0x147   :  { %v1465_v45 = vadd.f32 %v1464_v43, %v1463_v39  ;;  %v1466_v46 = vpop.f32.mrb[2].mxu1  ;;  %v1427_v47 = vpop.f32.mrb[3].mxu0 }
 0x148   :  { %v732_v48 = vadd.f32 %v1425_v42, %v2266_v40  ;;  %v1428_v49 = vadd.f32 %v1427_v47, %v1426_v44  ;;  %v1467_v50 = vpop.f32.mrb[3].mxu1 }
 0x149   :  { %v1468_v51 = vadd.f32 %v1467_v50, %v1466_v46 }
 0x14a   :  { %v797_v52 = vadd.f32 %v1465_v45, %v732_v48  ;;  %v735_v53 = vadd.f32 %v1428_v49, %v2266_v40 }
 0x14c   :  { %v800_v54 = vadd.f32 %v1468_v51, %v735_v53  ;;  %v1429_v55 = vpop.f32.mrb[4].mxu0 }
 0x14d   :  { %v1430_v56 = vpop.f32.mrb[5].mxu0 }
 0x14e   :  { %v1431_v57 = vadd.f32 %v1430_v56, %v1429_v55  ;;  %v1432_v58 = vpop.f32.mrb[6].mxu0 }
 0x14f   :  { %v1433_v59 = vpop.f32.mrb[7].mxu0  ;;  %v1469_v28 = vpop.f32.mrb[4].mxu1 }
 0x150   :  { %v1434_v61 = vadd.f32 %v1433_v59, %v1432_v58  ;;  %v740_v27 = vadd.f32 %v1431_v57, %v2266_v40  ;;  %v1470_v29 = vpop.f32.mrb[5].mxu1 }
 0x151   :  { %v1471_v30 = vadd.f32 %v1470_v29, %v1469_v28  ;;  %v1472_v31 = vpop.f32.mrb[6].mxu1 }
 0x152   :  { %v743_v60 = vadd.f32 %v1434_v61, %v2266_v40  ;;  %v1473_v33 = vpop.f32.mrb[7].mxu1 }
 0x153   :  { %v805_v34 = vadd.f32 %v1471_v30, %v740_v27  ;;  %v1474_v35 = vadd.f32 %v1473_v33, %v1472_v31 }
 0x154   :  { %v1435_v62 = vpop.f32.mrb[8].mxu0 }
 0x155   :  { %v1436_v63 = vpop.f32.mrb[9].mxu0  ;;  %v808_v39 = vadd.f32 %v1474_v35, %v743_v60 }
 0x156   :  { %v1437_v17 = vadd.f32 %v1436_v63, %v1435_v62  ;;  %v1438_v18 = vpop.f32.mrb[10].mxu0 }
 0x157   :  { %v1439_v19 = vpop.f32.mrb[11].mxu0  ;;  %v1475_v45 = vpop.f32.mrb[8].mxu1 }
 0x158   :  { %v1440_v20 = vadd.f32 %v1439_v19, %v1438_v18  ;;  %v748_v44 = vadd.f32 %v1437_v17, %v2266_v40  ;;  %v1476_v46 = vpop.f32.mrb[9].mxu1 }
 0x159   :  { %v1477_v49 = vadd.f32 %v1476_v46, %v1475_v45  ;;  %v1478_v50 = vpop.f32.mrb[10].mxu1 }
 0x15a   :  { %v751_v48 = vadd.f32 %v1440_v20, %v2266_v40  ;;  %v1479_v53 = vpop.f32.mrb[11].mxu1 }
 0x15b   :  { %v813_v55 = vadd.f32 %v1477_v49, %v748_v44  ;;  %v1480_v56 = vadd.f32 %v1479_v53, %v1478_v50 }
 0x15c   :  { %v1441_v21 = vpop.f32.mrb[12].mxu0 }
 0x15d   :  { %v1442_v22 = vpop.f32.mrb[13].mxu0  ;;  %v816_v61 = vadd.f32 %v1480_v56, %v751_v48 }
 0x15e   :  { %v1443_v23 = vadd.f32 %v1442_v22, %v1441_v21  ;;  %v1444_v24 = vpop.f32.mrb[14].mxu0 }
 0x15f   :  { %v1445_v25 = vpop.f32.mrb[15].mxu0  ;;  %v1481_v18 = vpop.f32.mrb[12].mxu1 }
 0x160   :  { %v1446_v26 = vadd.f32 %v1445_v25, %v1444_v24  ;;  %v756_v17 = vadd.f32 %v1443_v23, %v2266_v40  ;;  %v1482_v19 = vpop.f32.mrb[13].mxu1 }
 0x161   :  { %v1483_v21 = vadd.f32 %v1482_v19, %v1481_v18  ;;  %v1484_v22 = vpop.f32.mrb[14].mxu1 }
 0x162   :  { %v759_v20 = vadd.f32 %v1446_v26, %v2266_v40  ;;  %v1485_v25 = vpop.f32.mrb[15].mxu1 }
 0x163   :  { %v821_v27 = vadd.f32 %v1483_v21, %v756_v17  ;;  %v1486_v28 = vadd.f32 %v1485_v25, %v1484_v22 }
 0x164   :  { %v1503_v32 = vpop.f32.mrb[16].mxu0 }
 0x165   :  { %v1504_v36 = vpop.f32.mrb[17].mxu0  ;;  %v824_v31 = vadd.f32 %v1486_v28, %v759_v20 }
 0x166   :  { %v1505_v37 = vadd.f32 %v1504_v36, %v1503_v32  ;;  %v1506_v38 = vpop.f32.mrb[18].mxu0 }
 0x167   :  { %v1507_v41 = vpop.f32.mrb[19].mxu0 }
 0x168   :  { %v1508_v42 = vadd.f32 %v1507_v41, %v1506_v38  ;;  %v862_v43 = vadd.f32 %v1505_v37, %v797_v52 }
 0x16a   :  { %v865_v47 = vadd.f32 %v1508_v42, %v800_v54 }
 0x16c   :  { %v1509_v51 = vpop.f32.mrb[20].mxu0 }
 0x16d   :  { %v1510_v57 = vpop.f32.mrb[21].mxu0 }
 0x16e   :  { %v1511_v58 = vadd.f32 %v1510_v57, %v1509_v51  ;;  %v1512_v59 = vpop.f32.mrb[22].mxu0 }
 0x16f   :  { %v1513_v62 = vpop.f32.mrb[23].mxu0 }
 0x170   :  { %v1514_v63 = vadd.f32 %v1513_v62, %v1512_v59  ;;  %v870_v52 = vadd.f32 %v1511_v58, %v805_v34 }
 0x172   :  { %v873_v54 = vadd.f32 %v1514_v63, %v808_v39 }
 0x174   :  { %v1515_v24 = vpop.f32.mrb[24].mxu0 }
 0x175   :  { %v1516_v29 = vpop.f32.mrb[25].mxu0 }
 0x176   :  { %v1517_v60 = vadd.f32 %v1516_v29, %v1515_v24  ;;  %v1518_v30 = vpop.f32.mrb[26].mxu0 }
 0x177   :  { %v1519_v32 = vpop.f32.mrb[27].mxu0 }
 0x178   :  { %v1520_v33 = vadd.f32 %v1519_v32, %v1518_v30  ;;  %v878_v34 = vadd.f32 %v1517_v60, %v813_v55 }
 0x17a   :  { %v881_v35 = vadd.f32 %v1520_v33, %v816_v61 }
 0x17c   :  { %v1521_v23 = vpop.f32.mrb[28].mxu0 }
 0x17d   :  { %v1522_v36 = vpop.f32.mrb[29].mxu0 }
 0x17e   :  { %v1523_v37 = vadd.f32 %v1522_v36, %v1521_v23  ;;  %v1524_v38 = vpop.f32.mrb[30].mxu0 }
 0x17f   :  { %v1525_v39 = vpop.f32.mrb[31].mxu0 }
 0x180   :  { %v1526_v40 = vadd.f32 %v1525_v39, %v1524_v38  ;;  %v886_v26 = vadd.f32 %v1523_v37, %v821_v27 }
 0x181   :  { %v926_v41 = vpop.f32.mrb[16].mxu1 }
 0x182   :  { %v927_v42 = vadd.f32 %v926_v41, %v862_v43  ;;  %v928_v44 = vpop.f32.mrb[17].mxu1  ;;  %v889_v45 = vadd.f32 %v1526_v40, %v824_v31 }
 0x183   :  { %v929_v46 = vpop.f32.mrb[18].mxu1 }
 0x184   :  { %v957_v48 = vmax.f32 %v927_v42, 0.0   ;;  %v930_v49 = vadd.f32 %v929_v46, %v865_v47  ;;  %v931_v50 = vpop.f32.mrb[19].mxu1 }
 0x186   :  { %v958_v51 = vmax.f32 %v930_v49, 0.0   ;;  %v2423_v23 = vmov %v957_v48 }
 0x189   :  { %v934_v53 = vpop.f32.mrb[20].mxu1 }
 0x18a   :  { %v935_v56 = vadd.f32 %v934_v53, %v870_v52  ;;  %v936_v55 = vpop.f32.mrb[21].mxu1 }
 0x18b   :  { %v937_v57 = vpop.f32.mrb[22].mxu1 }
 0x18c   :  { %v959_v58 = vmax.f32 %v935_v56, 0.0   ;;  %v938_v59 = vadd.f32 %v937_v57, %v873_v54  ;;  %v939_v61 = vpop.f32.mrb[23].mxu1 }
 0x18e   :  { %v960_v62 = vmax.f32 %v938_v59, 0.0  }
 0x190   :  { %v2420_v33 = vmov %v960_v62 }
 0x191   :  { %v942_v63 = vpop.f32.mrb[24].mxu1 }
 0x192   :  { %v943_v17 = vadd.f32 %v942_v63, %v878_v34  ;;  %v944_v18 = vpop.f32.mrb[25].mxu1  ;;  %v2421_v34 = vmov %v959_v58 }
 0x193   :  { %v945_v19 = vpop.f32.mrb[26].mxu1 }
 0x194   :  { %v961_v43 = vmax.f32 %v943_v17, 0.0   ;;  %v946_v20 = vadd.f32 %v945_v19, %v881_v35  ;;  %v947_v21 = vpop.f32.mrb[27].mxu1  ;;  %v2422_v35 = vmov %v958_v51 }
 0x196   :  { %v962_v22 = vmax.f32 %v946_v20, 0.0   ;;  %v2419_v32 = vmov %v961_v43 }
 0x198   :  { %v2418_v31 = vmov %v962_v22 }
 0x199   :  { %v950_v24 = vpop.f32.mrb[28].mxu1 }
 0x19a   :  { %v951_v47 = vadd.f32 %v950_v24, %v886_v26  ;;  %v952_v25 = vpop.f32.mrb[29].mxu1  ;;  %1301 = sbr.rel (%p1388_p4) target bundleno = 672 (0x2a0), region = 57 }
 0x19b   :  { %v953_v27 = vpop.f32.mrb[30].mxu1 }
 0x19c   :  { %v963_v28 = vmax.f32 %v951_v47, 0.0   ;;  %v954_v52 = vadd.f32 %v953_v27, %v889_v45  ;;  %v955_v29 = vpop.f32.mrb[31].mxu1 }
 0x19e   :  { %v964_v60 = vmax.f32 %v954_v52, 0.0   ;;  %v2417_v30 = vmov %v963_v28 }
 0x1a0   :  { %v2416_v54 = vmov %v964_v60 }
 0x1a1 LB: > { %v1390_v36 = vcombine.low %v2207_v0, %v2209_v1  ;;  %v1391_v37 = vcombine.low %v2211_v2, %v2213_v3  ;;  %v1392_v38 = vcombine.low %v2215_v4, %v2217_v5  ;;  %v997_v39 = vpack.c.bf16 %v2061_v51, %v2065_v48  ;;  %s986_s25 = sadd.s32 1, %s2069_s25   ;;  %s2069_s25 = sphi %s2311_s25, %s986_s25   ;;  %v2065_v48 = vphi %v957_v48, %v2431_v48   ;;  %v2061_v51 = vphi %v958_v51, %v2430_v51   ;;  %v2057_v58 = vphi %v959_v58, %v2429_v58   ;;  %v2053_v62 = vphi %v960_v62, %v2428_v62   ;;  %v2049_v43 = vphi %v961_v43, %v2427_v43   ;;  %v2045_v22 = vphi %v962_v22, %v2426_v22   ;;  %v2041_v28 = vphi %v963_v28, %v2425_v28   ;;  %v2037_v60 = vphi %v964_v60, %v2424_v60  }
 0x1a2   : > { %v999_v40 = vpack.c.bf16 %v2045_v22, %v2049_v43  ;;  %v1393_v26 = vcombine.low %v2219_v6, %v2221_v7  ;;  %v1394_v41 = vcombine.low %v2223_v8, %v2225_v9  ;;  %v1395_v42 = vcombine.low %v2227_v10, %v2229_v11  ;;  %p985_p5 = scmp.ge.s32.totalorder %s986_s25, %s2409_s0 }
 0x1a3   : > { %1551 = vmatprep.subr.bf16.mxu0 %v1390_v36  ;;  %1599 = vmatprep.subr.bf16.mxu1 %v1390_v36  ;;  %v1396_v44 = vcombine.low %v2231_v12, %v2233_v13  ;;  %v1397_v45 = vcombine.low %v2235_v14, %v2237_v15  ;;  %v998_v46 = vpack.c.bf16 %v2053_v62, %v2057_v58 }
 0x1a4   : > { %1552 = vmatpush3.bf16.msra.mxu0 %v1390_v36  ;;  %1607 = vmatpush3.bf16.msra.mxu1 %v1390_v36  ;;  %v1000_v48 = vpack.c.bf16 %v2037_v60, %v2041_v28 }
 0x1a5   : > { %1553 = vmatprep.subr.bf16.mxu0 %v1391_v37  ;;  %1600 = vmatprep.subr.bf16.mxu1 %v1391_v37 }
 0x1a6   : > { %1567 = vmatprep.mubr.bf16.mxu0 %v997_v39  ;;  %1571 = vmatprep.mubr.bf16.mxu1 %v999_v40 }
 0x1a8   : > { %1554 = vmatpush3.bf16.msra.mxu0 %v1391_v37  ;;  %1608 = vmatpush3.bf16.msra.mxu1 %v1391_v37 }
 0x1a9   : > { %1555 = vmatprep.subr.bf16.mxu0 %v1392_v38  ;;  %1601 = vmatprep.subr.bf16.mxu1 %v1392_v38 }
 0x1ac   : > { %1556 = vmatpush3.bf16.msra.mxu0 %v1392_v38  ;;  %1609 = vmatpush3.bf16.msra.mxu1 %v1392_v38 }
 0x1ad   : > { %1557 = vmatprep.subr.bf16.mxu0 %v1393_v26  ;;  %1602 = vmatprep.subr.bf16.mxu1 %v1393_v26 }
 0x1b0   : > { %1558 = vmatpush3.bf16.msra.mxu0 %v1393_v26  ;;  %1610 = vmatpush3.bf16.msra.mxu1 %v1393_v26 }
 0x1b1   : > { %1559 = vmatprep.subr.bf16.mxu0 %v1394_v41  ;;  %1603 = vmatprep.subr.bf16.mxu1 %v1394_v41 }
 0x1b4   : > { %1560 = vmatpush3.bf16.msra.mxu0 %v1394_v41  ;;  %1611 = vmatpush3.bf16.msra.mxu1 %v1394_v41 }
 0x1b5   : > { %1561 = vmatprep.subr.bf16.mxu0 %v1395_v42  ;;  %1604 = vmatprep.subr.bf16.mxu1 %v1395_v42 }
 0x1b8   : > { %1562 = vmatpush3.bf16.msra.mxu0 %v1395_v42  ;;  %1612 = vmatpush3.bf16.msra.mxu1 %v1395_v42 }
 0x1b9   : > { %1563 = vmatprep.subr.bf16.mxu0 %v1396_v44  ;;  %1605 = vmatprep.subr.bf16.mxu1 %v1396_v44 }
 0x1bc   : > { %1564 = vmatpush3.bf16.msra.mxu0 %v1396_v44  ;;  %1613 = vmatpush3.bf16.msra.mxu1 %v1396_v44 }
 0x1bd   : > { %1565 = vmatprep.subr.bf16.mxu0 %v1397_v45  ;;  %1606 = vmatprep.subr.bf16.mxu1 %v1397_v45 }
 0x1c0   : > { %1566 = vmatpush3.bf16.msra.mxu0 %v1397_v45  ;;  %1614 = vmatpush3.bf16.msra.mxu1 %v1397_v45 }
 0x1c3   : > { %1568 = vmatmul.mubr.bf16.vlgmr.msra.gmra.mrb[0].mxu0 %v998_v46  ;;  %1572 = vmatmul.mubr.bf16.vlgmr.msra.gmra.mrb[0].mxu1 %v1000_v48 }
 0x296   : > { %v1569_v49 = vpop.f32.mrb[0].mxu0  ;;  %v1573_v50 = vpop.f32.mrb[0].mxu1 }
 0x297   : > { %v1096_v51 = vadd.f32 %v1569_v49, %v2242_v16  ;;  %v1112_v53 = vadd.f32 %v1573_v50, %v2242_v16  ;;  %v1087_v56 = vpop.f32.mrb[1].mxu0  ;;  %v1103_v55 = vpop.f32.mrb[1].mxu1 }
 0x298   : > { %v1088_v57 = vadd.f32 %v2242_v16, %v1087_v56  ;;  %v1104_v59 = vadd.f32 %v2242_v16, %v1103_v55  ;;  %v1570_v61 = vpop.f32.mrb[2].mxu0  ;;  %v1574_v63 = vpop.f32.mrb[2].mxu1  ;;  %988 = sbr.rel (!%p985_p5) target bundleno = 417 (0x1a1), region = 63 }
 0x299   : > { %v1120_v17 = vmax.f32 %v1096_v51, 0.0   ;;  %v1124_v18 = vmax.f32 %v1112_v53, 0.0   ;;  %v1099_v58 = vadd.f32 %v1570_v61, %v2242_v16  ;;  %v1115_v62 = vadd.f32 %v1574_v63, %v2242_v16  ;;  %v1090_v19 = vpop.f32.mrb[3].mxu0  ;;  %v1106_v43 = vpop.f32.mrb[3].mxu1 }
 0x29a   : > { %v1118_v20 = vmax.f32 %v1088_v57, 0.0   ;;  %v1122_v21 = vmax.f32 %v1104_v59, 0.0   ;;  %v1091_v22 = vadd.f32 %v2242_v16, %v1090_v19  ;;  %v1107_v24 = vadd.f32 %v2242_v16, %v1106_v43 }
 0x29b   : > { %v1121_v47 = vmax.f32 %v1099_v58, 0.0   ;;  %v1125_v25 = vmax.f32 %v1115_v62, 0.0   ;;  %v2425_v28 = vmov %v1124_v18  ;;  %v2429_v58 = vmov %v1120_v17 }
 0x29c   : > { %v1119_v27 = vmax.f32 %v1091_v22, 0.0   ;;  %v1123_v52 = vmax.f32 %v1107_v24, 0.0   ;;  %v2427_v43 = vmov %v1122_v21  ;;  %v2431_v48 = vmov %v1118_v20 }
 0x29d   : > { %v2424_v60 = vmov %v1125_v25  ;;  %v2428_v62 = vmov %v1121_v47  ;;  %v2432_v54 = vmov (%p985_p5), %v1125_v25  ;;  %v2433_v30 = vmov (%p985_p5), %v1124_v18 }
 0x29e   : > { %v2426_v22 = vmov %v1123_v52  ;;  %v2430_v51 = vmov %v1119_v27  ;;  %v2434_v31 = vmov (%p985_p5), %v1123_v52  ;;  %v2435_v32 = vmov (%p985_p5), %v1122_v21 }
 0x29f   :  { %v2436_v33 = vmov %v1121_v47  ;;  %v2437_v34 = vmov %v1120_v17  ;;  %v2438_v35 = vmov %v1119_v27  ;;  %v2439_v23 = vmov %v1118_v20 }
 0x2a0 PF:  { %v1841_v0 = vld [vmem:[#allocation10] sm:$0xff]   ;;  %v1842_v1 = vld [vmem:[#allocation10 + $0x8] sm:$0xff]   ;;  %v1126_v2 = vpack.c.bf16 %v2097_v35, %v2101_v23  ;;  %v1128_v3 = vpack.c.bf16 %v2081_v31, %v2085_v32  ;;  %v1843_v4 = vld [vmem:[#allocation10 + $0x10] sm:$0xff]   ;;  %v1127_v10 = vpack.c.bf16 %v2089_v33, %v2093_v34  ;;  %v1129_v11 = vpack.c.bf16 %v2073_v54, %v2077_v30  ;;  %s2111_s29 = smov [#allocation12]   ;;  %v2101_v23 = vphi %v2423_v23, %v2439_v23   ;;  %v2097_v35 = vphi %v2422_v35, %v2438_v35   ;;  %v2093_v34 = vphi %v2421_v34, %v2437_v34   ;;  %v2089_v33 = vphi %v2420_v33, %v2436_v33   ;;  %v2085_v32 = vphi %v2419_v32, %v2435_v32   ;;  %v2081_v31 = vphi %v2418_v31, %v2434_v31   ;;  %v2077_v30 = vphi %v2417_v30, %v2433_v30   ;;  %v2073_v54 = vphi %v2416_v54, %v2432_v54  }
 0x2a1   :  { %1575 = vmatprep.subr.bf16.mxu0 %v1841_v0  ;;  %1615 = vmatprep.subr.bf16.mxu1 %v1841_v0  ;;  %v1844_v5 = vld [vmem:[#allocation10 + $0x18] sm:$0xff]   ;;  %v1845_v6 = vld [vmem:[#allocation10 + $0x20] sm:$0xff]   ;;  %v1846_v7 = vld [vmem:[#allocation10 + $0x28] sm:$0xff]   ;;  %s1277_s30 = sshll.u32 %s2111_s29, 4  ;;  %s1278_s30 = int_to_ptr.vmem [resolvable:$true] %s1277_s30 }
 0x2a2   :  { %1576 = vmatpush3.bf16.msra.mxu0 %v1841_v0  ;;  %1623 = vmatpush3.bf16.msra.mxu1 %v1841_v0  ;;  %v1847_v8 = vld [vmem:[#allocation10 + $0x30] sm:$0xff]   ;;  %v1848_v9 = vld [vmem:[#allocation10 + $0x38] sm:$0xff]   ;;  %v1398_v12 = vld [vmem:[%s2412_s3 + $0x2] ss:$0 sm:$0xff]  ;;  %s1937_s3 = scalar_lea.vmem %s1278_s30, 1024  ;;  %p1942_p7 = scmp.lt.s32.totalorder %s1278_s30, %s1278_s30 }
 0x2a3   :  { %1577 = vmatprep.subr.bf16.mxu0 %v1842_v1  ;;  %1616 = vmatprep.subr.bf16.mxu1 %v1842_v1  ;;  %p1938_p6 = scmp.ne.s32.totalorder %s1278_s30, %s1937_s3  ;;  %p1943_p8 = scmp.lt.s32.totalorder %s1937_s3, %s1937_s3 }
 0x2a4   :  { %1591 = vmatprep.mubr.bf16.mxu0 %v1126_v2  ;;  %1595 = vmatprep.mubr.bf16.mxu1 %v1128_v3 }
 0x2a5   :  { %p1944_p9 = por %p1943_p8, %p1942_p7 }
 0x2a6   :  { %1578 = vmatpush3.bf16.msra.mxu0 %v1842_v1  ;;  %1624 = vmatpush3.bf16.msra.mxu1 %v1842_v1 }
 0x2a7   :  { %1579 = vmatprep.subr.bf16.mxu0 %v1843_v4  ;;  %1617 = vmatprep.subr.bf16.mxu1 %v1843_v4  ;;  %p1945_p10 = pnand %p1944_p9, %p1938_p6 }
 0x2aa   :  { %1580 = vmatpush3.bf16.msra.mxu0 %v1843_v4  ;;  %1625 = vmatpush3.bf16.msra.mxu1 %v1843_v4 }
 0x2ab   :  { %1581 = vmatprep.subr.bf16.mxu0 %v1844_v5  ;;  %1618 = vmatprep.subr.bf16.mxu1 %v1844_v5 }
 0x2ae   :  { %1582 = vmatpush3.bf16.msra.mxu0 %v1844_v5  ;;  %1626 = vmatpush3.bf16.msra.mxu1 %v1844_v5 }
 0x2af   :  { %1583 = vmatprep.subr.bf16.mxu0 %v1845_v6  ;;  %1619 = vmatprep.subr.bf16.mxu1 %v1845_v6 }
 0x2b2   :  { %1584 = vmatpush3.bf16.msra.mxu0 %v1845_v6  ;;  %1627 = vmatpush3.bf16.msra.mxu1 %v1845_v6 }
 0x2b3   :  { %1585 = vmatprep.subr.bf16.mxu0 %v1846_v7  ;;  %1620 = vmatprep.subr.bf16.mxu1 %v1846_v7 }
 0x2b6   :  { %1586 = vmatpush3.bf16.msra.mxu0 %v1846_v7  ;;  %1628 = vmatpush3.bf16.msra.mxu1 %v1846_v7 }
 0x2b7   :  { %1587 = vmatprep.subr.bf16.mxu0 %v1847_v8  ;;  %1621 = vmatprep.subr.bf16.mxu1 %v1847_v8 }
 0x2ba   :  { %1588 = vmatpush3.bf16.msra.mxu0 %v1847_v8  ;;  %1629 = vmatpush3.bf16.msra.mxu1 %v1847_v8 }
 0x2bb   :  { %1589 = vmatprep.subr.bf16.mxu0 %v1848_v9  ;;  %1622 = vmatprep.subr.bf16.mxu1 %v1848_v9 }
 0x2be   :  { %1590 = vmatpush3.bf16.msra.mxu0 %v1848_v9  ;;  %1630 = vmatpush3.bf16.msra.mxu1 %v1848_v9 }
 0x2c1   :  { %1592 = vmatmul.mubr.bf16.vlgmr.msra.gmra.mrb[0].mxu0 %v1127_v10  ;;  %1596 = vmatmul.mubr.bf16.vlgmr.msra.gmra.mrb[0].mxu1 %v1129_v11 }
 0x394   :  { %v1593_v13 = vpop.f32.mrb[0].mxu0  ;;  %v1597_v14 = vpop.f32.mrb[0].mxu1 }
 0x395   :  { %v1242_v15 = vadd.f32 %v1593_v13, %v1398_v12  ;;  %v1258_v16 = vadd.f32 %v1597_v14, %v1398_v12  ;;  %v1233_v28 = vpop.f32.mrb[1].mxu0  ;;  %v1249_v29 = vpop.f32.mrb[1].mxu1 }
 0x396   :  { %v1234_v60 = vadd.f32 %v1398_v12, %v1233_v28  ;;  %v1250_v31 = vadd.f32 %v1398_v12, %v1249_v29  ;;  %v1594_v32 = vpop.f32.mrb[2].mxu0  ;;  %v1598_v54 = vpop.f32.mrb[2].mxu1 }
 0x397   :  { %1266 = vst [vmem:[#allocation12 + $0x10] sm:$0xff] %v1242_v15  ;;  %1270 = vst [vmem:[#allocation12 + $0x30] sm:$0xff] %v1258_v16  ;;  %v1245_v30 = vadd.f32 %v1594_v32, %v1398_v12  ;;  %v1261_v33 = vadd.f32 %v1598_v54, %v1398_v12  ;;  %v1236_v34 = vpop.f32.mrb[3].mxu0  ;;  %v1252_v35 = vpop.f32.mrb[3].mxu1 }
 0x398   :  { %1264 = vst [vmem:[#allocation12] sm:$0xff] %v1234_v60  ;;  %1268 = vst [vmem:[#allocation12 + $0x20] sm:$0xff] %v1250_v31  ;;  %v1237_v23 = vadd.f32 %v1398_v12, %v1236_v34  ;;  %v1253_v36 = vadd.f32 %v1398_v12, %v1252_v35 }
 0x399   :  { %1267 = vst [vmem:[#allocation12 + $0x18] sm:$0xff] %v1245_v30  ;;  %1271 = vst [vmem:[#allocation12 + $0x38] sm:$0xff] %v1261_v33 }
 0x39a   :  { %1265 = vst [vmem:[#allocation12 + $0x8] sm:$0xff] %v1237_v23  ;;  %1269 = vst [vmem:[#allocation12 + $0x28] sm:$0xff] %v1253_v36 }
 0x39b   :  { %1948 = shalt.err (!%p1945_p10)
}
 0x39c   :  { %s1949_s11 = scalar_lea.hbm %s2415_s6, 1024 }
 0x39d   :  { %p1950_p11 = scmp.ne.s32.totalorder %s2415_s6, %s1949_s11  ;;  %p1953_p12 = scmp.lt.u32.totalorder %s1949_s11, %s2415_s6 }
 0x39f   :  { %p1955_p13 = pnand %p1953_p12, %p1950_p11 }
 0x3a1   :  { %1958 = shalt.err (!%p1955_p13)
}
 0x3a2   :  { %s2112_s15 = smov 128   ;;  %s2113_s16 = smov 8  }
 0x3a3   :  { %1283 = dma.vmem_to_hbm [thread:$0]  %s1278_s30, 1024, %s2415_s6, [#allocation6], %s2112_s15, %s2112_s15, %s2113_s16  }
 0x3a4   :  { %2033 = dma.done.wait [#allocation6], 1024  }
 0x3a5   :  { %2034 = vsyncadd [#allocation6], 4294966272 }
 0x3a6   :  { %1287 = vsyncpa [#allocation5], 1 }
 0x3a7   :  { %1288 = vsyncpa [#allocation8], 1 }
 0x3a8   :  { %1289 = vsyncpa [#allocation11], 1 }
 0x3a9   :  { %1290 = vsyncpa [#allocation6], 1 }

</bundles_post_ra>
